<compile_context>
chip_gen: v7x
topology: tpu7x:2x2x1
jax: 0.10.0
libtpu: 0.0.40
codegen_flags: <defaults>
</compile_context>

<pallas_src>
import math

import jax
import jax.numpy as jnp
from jax.experimental import pallas as pl
from jax.experimental.pallas import tpu as pltpu


def _round_up(x, m):
    return ((x + m - 1) // m) * m


def _timeemb_kernel(t_ref, w1_ref, w2_ref, embaux_ref, bias_ref, o_ref):
    """One batch tile: sinusoidal embedding -> Linear -> SiLU -> Linear.

    t_ref:      (TB, 1)   f32 timesteps
    w1_ref:     (Kp, Cp)  layer-1 weight, (in, out) layout (f32 or bf16)
    w2_ref:     (Cp, Cp)  layer-2 weight, (in, out) layout (f32 or bf16)
    embaux_ref: (2, Kp)   f32: row0 = [freq, freq, 0...], row1 = [0..0, pi/2..pi/2, 0...]
    bias_ref:   (2, Cp)   f32: row0 = b1, row1 = b2
    o_ref:      (TB, Cp)  f32 output
    """
    mm_dtype = w1_ref.dtype

    t = t_ref[...]                         # (TB, 1) f32
    freq2 = embaux_ref[0:1, :]             # (1, Kp) duplicated freq table
    phase = embaux_ref[1:2, :]             # (1, Kp) 0 for sin half, pi/2 for cos half
    b1 = bias_ref[0:1, :]                  # (1, Cp)
    b2 = bias_ref[1:2, :]                  # (1, Cp)

    # emb = [sin(t*f), cos(t*f)] via cos(x) == sin(x + pi/2); padded lanes give sin(0)=0.
    emb = jnp.sin(t * freq2 + phase)       # (TB, Kp) f32, no concat / relayout

    # Layer 1: one fused MXU matmul (f32 accumulation); bias add + SiLU in f32.
    h = jnp.dot(emb.astype(mm_dtype), w1_ref[...],
                preferred_element_type=jnp.float32) + b1            # (TB, Cp)
    h = h * jax.nn.sigmoid(h)                                       # SiLU

    # Layer 2.
    out = jnp.dot(h.astype(mm_dtype), w2_ref[...],
                  preferred_element_type=jnp.float32) + b2          # (TB, Cp)
    o_ref[...] = out.astype(o_ref.dtype)


def prepare_time_emb_params(w1, b1, w2, b2, n_channels, *, mm_dtype=jnp.bfloat16):
    """Pad / pack / cast the parameters ONCE (hoisted out of the per-call path).

    w1: (C//4, C), b1: (C,), w2: (C, C), b2: (C,)  -- (in, out) layout.
    mm_dtype: dtype fed to the MXU (bf16 default halves weight HBM traffic;
              float32 reproduces the PyTorch numerics exactly).
    """
    C = n_channels
    H = C // 8
    K = C // 4
    assert C % 8 == 0, "n_channels must be divisible by 8"
    assert H >= 2, "n_channels must be >= 16 (log(10000)/(half_dim-1))"
    assert w1.shape == (K, C) and w2.shape == (C, C)
    assert b1.shape == (C,) and b2.shape == (C,)
    f32 = jnp.float32

    # Lane-dense padding only when it pays off (C >= 128); exact (padded rows/cols = 0).
    Cp = C if C < 128 else _round_up(C, 128)
    Kp = K if K < 128 else _round_up(K, 128)

    w1p = jnp.zeros((Kp, Cp), f32).at[:K, :C].set(jnp.asarray(w1, f32)).astype(mm_dtype)
    w2p = jnp.zeros((Cp, Cp), f32).at[:C, :C].set(jnp.asarray(w2, f32)).astype(mm_dtype)

    scale = math.log(10000.0) / (H - 1)
    freq = jnp.exp(-scale * jnp.arange(H, dtype=f32))                 # (H,)
    emb_aux = jnp.zeros((2, Kp), f32)
    emb_aux = emb_aux.at[0, :H].set(freq).at[0, H:K].set(freq)        # [f, f, 0...]
    emb_aux = emb_aux.at[1, H:K].set(math.pi / 2.0)                   # [0, pi/2, 0...]

    bias = jnp.zeros((2, Cp), f32)
    bias = bias.at[0, :C].set(jnp.asarray(b1, f32))
    bias = bias.at[1, :C].set(jnp.asarray(b2, f32))

    return {"w1p": w1p, "w2p": w2p, "emb_aux": emb_aux, "bias": bias,
            "C": C, "Cp": Cp, "Kp": Kp}


def time_emb_apply(t, params, *, block_b=None):
    """t: (B,) float.  Returns (B, C) float32.  `params` from prepare_time_emb_params."""
    C, Cp, Kp = params["C"], params["Cp"], params["Kp"]
    w1p, w2p = params["w1p"], params["w2p"]
    emb_aux, bias = params["emb_aux"], params["bias"]

    B = t.shape[0]
    f32 = jnp.float32

    if block_b is None:
        block_b = 256 if Cp >= 1536 else 512   # v7x VMEM headroom for large Cp

    # Batch tiling: sublane-aligned, and aim for >= 2 grid steps so both v7x
    # TensorCores get work ("parallel" semantics shards the grid axis).
    TB = min(block_b, max(8, _round_up((B + 1) // 2, 8)))
    Bp = _round_up(B, TB)
    grid = (Bp // TB,)

    t2d = t.astype(f32).reshape(B, 1)
    if Bp != B:
        t2d = jnp.zeros((Bp, 1), f32).at[:B].set(t2d)

    # Explicit (generous) scoped-VMEM budget: resident weights + aux + pipelined
    # t/out tiles + intermediate headroom.  Never below 32 MiB (platform default).
    w_item = w1p.dtype.itemsize
    needed = (2 * TB * 4
              + 2 * (Kp * Cp + Cp * Cp) * w_item
              + 2 * (2 * Kp + 2 * Cp) * 4
              + 2 * TB * Cp * 4
              + (TB * Kp + 2 * TB * Cp) * 4)
    vlim = int(min(max(needed + (4 << 20), 32 << 20), 128 << 20))

    out_shape = jax.ShapeDtypeStruct((Bp, Cp), f32)

    def run(single_buffer_consts):
        def const_spec(shape):
            # Constant block index -> loaded once; Buffered(1) avoids wasting a 2nd
            # VMEM buffer on the resident weights.
            if single_buffer_consts:
                return pl.BlockSpec(shape, lambda i: (0, 0),
                                    pipeline_mode=pl.Buffered(1))
            return pl.BlockSpec(shape, lambda i: (0, 0))

        return pl.pallas_call(
            _timeemb_kernel,
            out_shape=out_shape,
            grid_spec=pltpu.PrefetchScalarGridSpec(
                num_scalar_prefetch=0,
                grid=grid,
                in_specs=[
                    pl.BlockSpec((TB, 1), lambda i: (i, 0)),   # t tile (pipelined)
                    const_spec((Kp, Cp)),                      # w1 (resident)
                    const_spec((Cp, Cp)),                      # w2 (resident)
                    const_spec((2, Kp)),                       # freq2 / phase
                    const_spec((2, Cp)),                       # b1 / b2
                ],
                out_specs=pl.BlockSpec((TB, Cp), lambda i: (i, 0)),
            ),
            compiler_params=pltpu.CompilerParams(
                dimension_semantics=("parallel",),
                vmem_limit_bytes=vlim),
        )(t2d, w1p, w2p, emb_aux, bias)

    try:
        out = run(True)
    except Exception:
        # Fallback if this Pallas build rejects pipeline_mode / Buffered(1).
        out = run(False)

    if Bp == B and Cp == C:
        return out                 # no post-kernel slice copy
    return out[:B, :C]


def time_emb(t, w1, b1, w2, b2, n_channels, *, mm_dtype=jnp.bfloat16, block_b=None):
    """One-shot convenience wrapper.  For repeated calls, prepare once and reuse."""
    params = prepare_time_emb_params(w1, b1, w2, b2, n_channels, mm_dtype=mm_dtype)
    return time_emb_apply(t, params, block_b=block_b)


def _ref_time_emb(t, w1, b1, w2, b2, n_channels):
    """Pure-JAX reference mirroring the PyTorch forward."""
    half_dim = n_channels // 8
    emb = math.log(10000.0) / (half_dim - 1)
    emb = jnp.exp(-emb * jnp.arange(half_dim, dtype=jnp.float32))
    emb = t[:, None] * emb[None, :]
    emb = jnp.concatenate([jnp.sin(emb), jnp.cos(emb)], axis=-1)
    h = emb @ w1 + b1
    h = h * jax.nn.sigmoid(h)
    return h @ w2 + b2


if __name__ == "__main__":
    n_channels = 32
    B = 8

    key = jax.random.PRNGKey(0)
    k_t, k_w1, k_b1, k_w2, k_b2 = jax.random.split(key, 5)

    # Deterministic parameter init (shapes from nn.Linear in __init__),
    # stored as (in, out) so the kernel does x @ W + b.
    in1, out1 = n_channels // 4, n_channels
    in2, out2 = n_channels, n_channels
    lim1 = 1.0 / math.sqrt(in1)
    lim2 = 1.0 / math.sqrt(in2)
    w1 = jax.random.uniform(k_w1, (in1, out1), jnp.float32, -lim1, lim1)
    b1 = jax.random.uniform(k_b1, (out1,), jnp.float32, -lim1, lim1)
    w2 = jax.random.uniform(k_w2, (in2, out2), jnp.float32, -lim2, lim2)
    b2 = jax.random.uniform(k_b2, (out2,), jnp.float32, -lim2, lim2)

    t = jax.random.uniform(k_t, (B,), jnp.float32, 0.0, 1000.0)
    ref = _ref_time_emb(t, w1, b1, w2, b2, n_channels)

    # Exact-numerics path (f32 weights / matmuls).  Tolerance leaves room for the
    # sin(x + pi/2) phase trick: the f32 rounding of (x + pi/2) at x ~ 1e3 shifts
    # cos by a few 1e-5 relative to the reference's direct cos.
    params_f32 = prepare_time_emb_params(w1, b1, w2, b2, n_channels,
                                         mm_dtype=jnp.float32)
    out = jax.block_until_ready(time_emb_apply(t, params_f32))
    assert out.shape == (B, n_channels)
    err = float(jnp.max(jnp.abs(out - ref)))
    assert jnp.allclose(out, ref, atol=2e-4, rtol=2e-4), f"f32 path max abs err {err}"

    # Default path: bf16 weights in HBM / bf16 MXU operands, f32 accumulation.
    params_bf16 = prepare_time_emb_params(w1, b1, w2, b2, n_channels)
    out_bf = jax.block_until_ready(time_emb_apply(t, params_bf16))
    assert out_bf.shape == (B, n_channels)
    err_bf = float(jnp.max(jnp.abs(out_bf - ref)))
    assert jnp.allclose(out_bf, ref, atol=5e-2, rtol=5e-2), (
        f"bf16 path max abs err {err_bf}")

    # NOTE: for C < 128 (like this demo) the kernel is grid-overhead dominated;
    # padding is skipped and for production such a tiny op is best fused into its
    # consumer.
    print("KERNEL_OK")
</pallas_src>

<mosaic_0001>
module attributes {stable_mosaic.version = 11 : i64} {
  func.func @_timeemb_kernel(%arg0: i32, %arg1: memref<8x1xf32, #tpu.memory_space<vmem>>, %arg2: memref<8x32xf32, #tpu.memory_space<vmem>>, %arg3: memref<32x32xf32, #tpu.memory_space<vmem>>, %arg4: memref<2x8xf32, #tpu.memory_space<vmem>>, %arg5: memref<2x32xf32, #tpu.memory_space<vmem>>, %arg6: memref<8x32xf32, #tpu.memory_space<vmem>>) attributes {dimension_semantics = [#tpu.dimension_semantics<parallel>], iteration_bounds = array<i64: 1>, scalar_prefetch = 0 : i64, scratch_operands = 0 : i64, tpu.core_type = #tpu.core_type<tc>, window_params = [{transform_indices = @transform_0, window_bounds = array<i64: 8, 1>}, {pipeline_mode = #tpu.pipeline_mode<synchronous>, transform_indices = @transform_1, window_bounds = array<i64: 8, 32>}, {pipeline_mode = #tpu.pipeline_mode<synchronous>, transform_indices = @transform_2, window_bounds = array<i64: 32, 32>}, {pipeline_mode = #tpu.pipeline_mode<synchronous>, transform_indices = @transform_3, window_bounds = array<i64: 2, 8>}, {pipeline_mode = #tpu.pipeline_mode<synchronous>, transform_indices = @transform_4, window_bounds = array<i64: 2, 32>}, {transform_indices = @transform_5, window_bounds = array<i64: 8, 32>}]} {
    %c0 = arith.constant 0 : index
    %c0_0 = arith.constant 0 : index
    %0 = vector.load %arg1[%c0, %c0_0] : memref<8x1xf32, #tpu.memory_space<vmem>>, vector<8x1xf32>
    %c0_1 = arith.constant 0 : index
    %c0_2 = arith.constant 0 : index
    %1 = vector.load %arg4[%c0_1, %c0_2] : memref<2x8xf32, #tpu.memory_space<vmem>>, vector<1x8xf32>
    %c1 = arith.constant 1 : index
    %c0_3 = arith.constant 0 : index
    %2 = vector.load %arg4[%c1, %c0_3] : memref<2x8xf32, #tpu.memory_space<vmem>>, vector<1x8xf32>
    %c0_4 = arith.constant 0 : index
    %c0_5 = arith.constant 0 : index
    %3 = vector.load %arg5[%c0_4, %c0_5] : memref<2x32xf32, #tpu.memory_space<vmem>>, vector<1x32xf32>
    %c1_6 = arith.constant 1 : index
    %c0_7 = arith.constant 0 : index
    %4 = vector.load %arg5[%c1_6, %c0_7] : memref<2x32xf32, #tpu.memory_space<vmem>>, vector<1x32xf32>
    %5 = vector.broadcast %0 : vector<8x1xf32> to vector<8x8xf32>
    %6 = vector.broadcast %1 : vector<1x8xf32> to vector<8x8xf32>
    %7 = arith.mulf %5, %6 : vector<8x8xf32>
    %8 = vector.broadcast %2 : vector<1x8xf32> to vector<8x8xf32>
    %9 = arith.addf %7, %8 : vector<8x8xf32>
    %10 = math.sin %9 : vector<8x8xf32>
    %c0_8 = arith.constant 0 : index
    %c0_9 = arith.constant 0 : index
    %11 = vector.load %arg2[%c0_8, %c0_9] : memref<8x32xf32, #tpu.memory_space<vmem>>, vector<8x32xf32>
    %cst = arith.constant dense<0.000000e+00> : vector<8x32xf32>
    %12 = tpu.matmul %10, %11, %cst {dimension_numbers = #tpu.dot_dimension_numbers<[1], [0], [0], [1], [0, 0, 1, 1], [], []>} : vector<8x8xf32>, vector<8x32xf32>, vector<8x32xf32> -> vector<8x32xf32>
    %13 = vector.broadcast %3 : vector<1x32xf32> to vector<8x32xf32>
    %14 = arith.addf %12, %13 : vector<8x32xf32>
    %15 = arith.negf %14 : vector<8x32xf32>
    %16 = math.exp %15 : vector<8x32xf32>
    %cst_10 = arith.constant 1.000000e+00 : f32
    %17 = vector.broadcast %cst_10 : f32 to vector<8x32xf32>
    %18 = arith.addf %17, %16 : vector<8x32xf32>
    %19 = arith.divf %17, %18 : vector<8x32xf32>
    %20 = arith.mulf %14, %19 : vector<8x32xf32>
    %c0_11 = arith.constant 0 : index
    %c0_12 = arith.constant 0 : index
    %21 = vector.load %arg3[%c0_11, %c0_12] : memref<32x32xf32, #tpu.memory_space<vmem>>, vector<32x32xf32>
    %cst_13 = arith.constant dense<0.000000e+00> : vector<8x32xf32>
    %22 = tpu.matmul %20, %21, %cst_13 {dimension_numbers = #tpu.dot_dimension_numbers<[1], [0], [0], [1], [0, 0, 1, 1], [], []>} : vector<8x32xf32>, vector<32x32xf32>, vector<8x32xf32> -> vector<8x32xf32>
    %23 = vector.broadcast %4 : vector<1x32xf32> to vector<8x32xf32>
    %24 = arith.addf %22, %23 : vector<8x32xf32>
    %c0_14 = arith.constant 0 : index
    %c0_15 = arith.constant 0 : index
    %25 = vector.load %arg6[%c0_14, %c0_15] : memref<8x32xf32, #tpu.memory_space<vmem>>, vector<8x32xf32>
    tpu.vector_store %arg6[%c0_14, %c0_15], %24 {strides = array<i32>} : memref<8x32xf32, #tpu.memory_space<vmem>>, vector<8x32xf32>,
    return
  }
  func.func @transform_0(%arg0: i32) -> (i32, i32) {
    %c0_i32 = arith.constant 0 : i32
    %c0_i32_0 = arith.constant 0 : i32
    return %arg0, %c0_i32 : i32, i32
  }
  func.func @transform_1(%arg0: i32) -> (i32, i32) {
    %c0_i32 = arith.constant 0 : i32
    %c0_i32_0 = arith.constant 0 : i32
    %c0_i32_1 = arith.constant 0 : i32
    return %c0_i32, %c0_i32_0 : i32, i32
  }
  func.func @transform_2(%arg0: i32) -> (i32, i32) {
    %c0_i32 = arith.constant 0 : i32
    %c0_i32_0 = arith.constant 0 : i32
    %c0_i32_1 = arith.constant 0 : i32
    return %c0_i32, %c0_i32_0 : i32, i32
  }
  func.func @transform_3(%arg0: i32) -> (i32, i32) {
    %c0_i32 = arith.constant 0 : i32
    %c0_i32_0 = arith.constant 0 : i32
    %c0_i32_1 = arith.constant 0 : i32
    return %c0_i32, %c0_i32_0 : i32, i32
  }
  func.func @transform_4(%arg0: i32) -> (i32, i32) {
    %c0_i32 = arith.constant 0 : i32
    %c0_i32_0 = arith.constant 0 : i32
    %c0_i32_1 = arith.constant 0 : i32
    return %c0_i32, %c0_i32_0 : i32, i32
  }
  func.func @transform_5(%arg0: i32) -> (i32, i32) {
    %c0_i32 = arith.constant 0 : i32
    %c0_i32_0 = arith.constant 0 : i32
    return %arg0, %c0_i32 : i32, i32
  }
}

module attributes {stable_mosaic.version = 11 : i64} {
  func.func @_timeemb_kernel(%arg0: i32, %arg1: memref<8x1xf32, #tpu.memory_space<vmem>>, %arg2: memref<8x32xf32, #tpu.memory_space<vmem>>, %arg3: memref<32x32xf32, #tpu.memory_space<vmem>>, %arg4: memref<2x8xf32, #tpu.memory_space<vmem>>, %arg5: memref<2x32xf32, #tpu.memory_space<vmem>>, %arg6: memref<8x32xf32, #tpu.memory_space<vmem>>) attributes {dimension_semantics = [#tpu.dimension_semantics<parallel>], iteration_bounds = array<i64: 1>, scalar_prefetch = 0 : i64, scratch_operands = 0 : i64, tpu.core_type = #tpu.core_type<tc>, window_params = [{transform_indices = @transform_0, window_bounds = array<i64: 8, 1>}, {pipeline_mode = #tpu.pipeline_mode<synchronous>, transform_indices = @transform_1, window_bounds = array<i64: 8, 32>}, {pipeline_mode = #tpu.pipeline_mode<synchronous>, transform_indices = @transform_2, window_bounds = array<i64: 32, 32>}, {pipeline_mode = #tpu.pipeline_mode<synchronous>, transform_indices = @transform_3, window_bounds = array<i64: 2, 8>}, {pipeline_mode = #tpu.pipeline_mode<synchronous>, transform_indices = @transform_4, window_bounds = array<i64: 2, 32>}, {transform_indices = @transform_5, window_bounds = array<i64: 8, 32>}]} {
    %c0 = arith.constant 0 : index
    %c0_0 = arith.constant 0 : index
    %0 = vector.load %arg1[%c0, %c0_0] : memref<8x1xf32, #tpu.memory_space<vmem>>, vector<8x1xf32>
    %c0_1 = arith.constant 0 : index
    %c0_2 = arith.constant 0 : index
    %1 = vector.load %arg4[%c0_1, %c0_2] : memref<2x8xf32, #tpu.memory_space<vmem>>, vector<1x8xf32>
    %c1 = arith.constant 1 : index
    %c0_3 = arith.constant 0 : index
    %2 = vector.load %arg4[%c1, %c0_3] : memref<2x8xf32, #tpu.memory_space<vmem>>, vector<1x8xf32>
    %c0_4 = arith.constant 0 : index
    %c0_5 = arith.constant 0 : index
    %3 = vector.load %arg5[%c0_4, %c0_5] : memref<2x32xf32, #tpu.memory_space<vmem>>, vector<1x32xf32>
    %c1_6 = arith.constant 1 : index
    %c0_7 = arith.constant 0 : index
    %4 = vector.load %arg5[%c1_6, %c0_7] : memref<2x32xf32, #tpu.memory_space<vmem>>, vector<1x32xf32>
    %5 = vector.broadcast %0 : vector<8x1xf32> to vector<8x8xf32>
    %6 = vector.broadcast %1 : vector<1x8xf32> to vector<8x8xf32>
    %7 = arith.mulf %5, %6 : vector<8x8xf32>
    %8 = vector.broadcast %2 : vector<1x8xf32> to vector<8x8xf32>
    %9 = arith.addf %7, %8 : vector<8x8xf32>
    %10 = math.sin %9 : vector<8x8xf32>
    %c0_8 = arith.constant 0 : index
    %c0_9 = arith.constant 0 : index
    %11 = vector.load %arg2[%c0_8, %c0_9] : memref<8x32xf32, #tpu.memory_space<vmem>>, vector<8x32xf32>
    %cst = arith.constant dense<0.000000e+00> : vector<8x32xf32>
    %12 = tpu.matmul %10, %11, %cst {dimension_numbers = #tpu.dot_dimension_numbers<[1], [0], [0], [1], [0, 0, 1, 1], [], []>} : vector<8x8xf32>, vector<8x32xf32>, vector<8x32xf32> -> vector<8x32xf32>
    %13 = vector.broadcast %3 : vector<1x32xf32> to vector<8x32xf32>
    %14 = arith.addf %12, %13 : vector<8x32xf32>
    %15 = arith.negf %14 : vector<8x32xf32>
    %16 = math.exp %15 : vector<8x32xf32>
    %cst_10 = arith.constant 1.000000e+00 : f32
    %17 = vector.broadcast %cst_10 : f32 to vector<8x32xf32>
    %18 = arith.addf %17, %16 : vector<8x32xf32>
    %19 = arith.divf %17, %18 : vector<8x32xf32>
    %20 = arith.mulf %14, %19 : vector<8x32xf32>
    %c0_11 = arith.constant 0 : index
    %c0_12 = arith.constant 0 : index
    %21 = vector.load %arg3[%c0_11, %c0_12] : memref<32x32xf32, #tpu.memory_space<vmem>>, vector<32x32xf32>
    %cst_13 = arith.constant dense<0.000000e+00> : vector<8x32xf32>
    %22 = tpu.matmul %20, %21, %cst_13 {dimension_numbers = #tpu.dot_dimension_numbers<[1], [0], [0], [1], [0, 0, 1, 1], [], []>} : vector<8x32xf32>, vector<32x32xf32>, vector<8x32xf32> -> vector<8x32xf32>
    %23 = vector.broadcast %4 : vector<1x32xf32> to vector<8x32xf32>
    %24 = arith.addf %22, %23 : vector<8x32xf32>
    %c0_14 = arith.constant 0 : index
    %c0_15 = arith.constant 0 : index
    %25 = vector.load %arg6[%c0_14, %c0_15] : memref<8x32xf32, #tpu.memory_space<vmem>>, vector<8x32xf32>
    tpu.vector_store %arg6[%c0_14, %c0_15], %24 {strides = array<i32>} : memref<8x32xf32, #tpu.memory_space<vmem>>, vector<8x32xf32>,
    return
  }
  func.func @transform_0(%arg0: i32) -> (i32, i32) {
    %c0_i32 = arith.constant 0 : i32
    %c0_i32_0 = arith.constant 0 : i32
    return %arg0, %c0_i32 : i32, i32
  }
  func.func @transform_1(%arg0: i32) -> (i32, i32) {
    %c0_i32 = arith.constant 0 : i32
    %c0_i32_0 = arith.constant 0 : i32
    %c0_i32_1 = arith.constant 0 : i32
    return %c0_i32, %c0_i32_0 : i32, i32
  }
  func.func @transform_2(%arg0: i32) -> (i32, i32) {
    %c0_i32 = arith.constant 0 : i32
    %c0_i32_0 = arith.constant 0 : i32
    %c0_i32_1 = arith.constant 0 : i32
    return %c0_i32, %c0_i32_0 : i32, i32
  }
  func.func @transform_3(%arg0: i32) -> (i32, i32) {
    %c0_i32 = arith.constant 0 : i32
    %c0_i32_0 = arith.constant 0 : i32
    %c0_i32_1 = arith.constant 0 : i32
    return %c0_i32, %c0_i32_0 : i32, i32
  }
  func.func @transform_4(%arg0: i32) -> (i32, i32) {
    %c0_i32 = arith.constant 0 : i32
    %c0_i32_0 = arith.constant 0 : i32
    %c0_i32_1 = arith.constant 0 : i32
    return %c0_i32, %c0_i32_0 : i32, i32
  }
  func.func @transform_5(%arg0: i32) -> (i32, i32) {
    %c0_i32 = arith.constant 0 : i32
    %c0_i32_0 = arith.constant 0 : i32
    return %arg0, %c0_i32 : i32, i32
  }
}

</mosaic_0001>

<bundles_post_ra>
// kernel: tpu_custom_call.1
= control target key start
LH: loop header
LB: loop body
LE: loop exit
PB: predicated region body
PF: predicated region fallthrough
CT: control target
= control target key end

     0   :  { %10 = vsyncpa [#allocation3], 0  ;;  %s565_s0 = inlined_call_operand.vmem [shape: f32[8,1], index: 0, kind: input, shape index: {}]   ;;  %s566_s1 = inlined_call_operand.vmem [shape: f32[8,32], index: 1, kind: input, shape index: {}]   ;;  %s567_s2 = inlined_call_operand.hbm [shape: f32[32,32], index: 2, kind: input, shape index: {}]   ;;  %s568_s3 = inlined_call_operand.vmem [shape: f32[2,8], index: 3, kind: input, shape index: {}]   ;;  %s569_s4 = inlined_call_operand.vmem [shape: f32[2,32], index: 4, kind: input, shape index: {}]   ;;  %s570_s5 = inlined_call_operand.hbm [shape: f32[8,32], index: 5, kind: output, shape index: {}]  }
   0x1   :  { %11 = vsyncpa [#allocation4], 0  ;;  %s458_s18 = smov [#allocation2]   ;;  %s410_s22 = scalar_lea.hbm %s567_s2, 512 }
   0x2   :  { %s21_s19 = sshll.u32 %s458_s18, 4  ;;  %p411_p0 = scmp.ne.s32.totalorder %s567_s2, %s410_s22  ;;  %s22_s19 = int_to_ptr.vmem [resolvable:$true] %s21_s19 }
   0x3   :  { %p414_p1 = scmp.lt.u32.totalorder %s410_s22, %s567_s2 }
   0x5   :  { %p416_p2 = pnand %p414_p1, %p411_p0 }
   0x7   :  { %419 = shalt.err (!%p416_p2)
}
   0x8   :  { %s420_s27 = scalar_lea.vmem %s22_s19, 512  ;;  %p425_p4 = scmp.lt.s32.totalorder %s22_s19, %s22_s19 }
   0x9   :  { %p421_p3 = scmp.ne.s32.totalorder %s22_s19, %s420_s27  ;;  %p426_p5 = scmp.lt.s32.totalorder %s420_s27, %s420_s27 }
   0xb   :  { %p427_p6 = por %p426_p5, %p425_p4 }
   0xd   :  { %p428_p7 = pnand %p427_p6, %p421_p3 }
   0xf   :  { %431 = shalt.err (!%p428_p7)
}
  0x10   :  { %s459_s28 = smov 128   ;;  %s460_s29 = smov 8  }
  0x11   :  { %27 = dma.hbm_to_vmem [thread:$0]  %s567_s2, 512, %s22_s19, [#allocation3], %s459_s28, %s459_s28, %s460_s29  }
  0x12   :  { %454 = dma.done.wait [#allocation3], 512  }
  0x13   :  { %455 = vsyncadd [#allocation3], 4294966784  ;;  %v461_v0 = vmov 0   ;;  %v35_v1 = vld [vmem:[%s565_s0] sm:$0xff]  ;;  %v462_v3 = vmov 0.0   ;;  %vm463_vm0 = vmmov 0  }
  0x14   :  { %401 = vset.pattern.permute.xlu0 %v461_v0  ;;  %v159_v2 = vld [vmem:[%s566_s1] sm:$0xff]  ;;  %361 = vmatprep.subr.mxu0 %v462_v3  ;;  %v464_v20 = vmov 2102212464   ;;  %v465_v22 = vmov 920167782   ;;  %vm164_vm13 = vcmask 64512  }
  0x15   :  { %42 = vperm.xlu0 %401, %v35_v1   ;;  %363 = vmatprep.mubr.msk.f32.mxu0 %vm463_vm0, %v462_v3  ;;  %v343_v4 = vld [vmem:[%s568_s3] ss:$0 sm:$0xff]  ;;  %v344_v5 = vld [vmem:[%s568_s3 + $0x1] ss:$0 sm:$0xff]  ;;  %v466_v26 = vmov 1326507024  }
  0x16   :  { %362 = vmatpush3.msra.mxu0 %v159_v2  ;;  %374 = vmatprep.mubr.msk.f32.mxu1 %vm463_vm0, %v462_v3  ;;  %v467_v28 = vmov 683565275   ;;  %v468_v30 = vmov 2475754826   ;;  %v469_v33 = vmov 2131351028  }
  0x17   :  { %vm253_vm15 = vcmask 261120   ;;  %s471_s15 = smov [#allocation5]  }
  0x18   :  { %s334_s16 = sshll.u32 %s471_s15, 4  ;;  %s335_s16 = int_to_ptr.vmem [resolvable:$true] %s334_s16 }
  0x19   :  { %s432_s17 = scalar_lea.vmem %s335_s16, 128  ;;  %p437_p9 = scmp.lt.s32.totalorder %s335_s16, %s335_s16 }
  0x1a   :  { %p433_p8 = scmp.ne.s32.totalorder %s335_s16, %s432_s17  ;;  %p438_p10 = scmp.lt.s32.totalorder %s432_s17, %s432_s17 }
  0x1c   :  { %p439_p11 = por %p438_p10, %p437_p9 }
  0x1e   :  { %p440_p12 = pnand %p439_p11, %p433_p8 }
  0x94   :  { %v43_v6 = vpop.permute.xlu0 %42 }
  0x95   :  { %v49_v7 = vmul.f32 %v343_v4, %v43_v6 }
  0x97   :  { %v526_v8 = vadd.f32 %v344_v5, %v49_v7 }
  0x99   :  { %v58_v9 = vand.u32 2139095040, %v526_v8  ;;  %v55_v10 = vand.u32 2147483647, %v526_v8  ;;  %vm57_vm8 = vcmp.lt.s32.totalorder %v526_v8, 0  ;;  %vm147_vm14 = vweird.f32 %v526_v8 }
  0x9b   :  { %v59_v11 = vshrl.u32 %v58_v9, 23  ;;  %v62_v13 = vand.u32 8388607, %v55_v10  ;;  %vm56_vm9 = vcmp.le.f32.partialorder %v55_v10, 0.7853982 }
  0x9d   :  { %v345_v12 = vadd.s32 4294967169, %v59_v11  ;;  %v63_v16 = vor.u32 8388608, %v62_v13 }
  0x9f   :  { %v65_v14 = vadd.s32 1, %v345_v12  ;;  %v103_v24 = vshll.u32 %v63_v16, 8 }
  0xa1   :  { %vm66_vm1 = vcmp.gt.s32.totalorder %v65_v14, 0 }
  0xa2   :  { %v67_v15 = vsel %vm66_vm1, %v65_v14, 0 }
  0xa3   :  { %v69_v17 = vand.u32 31, %v67_v15  ;;  %v68_v18 = vshrl.u32 %v67_v15, 5 }
  0xa5   :  { %v70_v19 = vsub.s32 32, %v69_v17  ;;  %v81_v21 = vshll.u32 %v464_v20, %v69_v17  ;;  %v84_v23 = vshll.u32 %v465_v22, %v69_v17  ;;  %v72_v29 = vshll.u32 %v467_v28, %v69_v17 }
  0xa6   :  { %v75_v32 = vshll.u32 %v468_v30, %v69_v17  ;;  %v78_v35 = vshll.u32 %v469_v33, %v69_v17  ;;  %vm90_vm2 = vcmp.lt.s32.totalorder %v68_v18, 4  ;;  %vm87_vm3 = vcmp.lt.s32.totalorder %v68_v18, 1 }
  0xa7   :  { %v82_v25 = vshrl.u32 %v465_v22, %v70_v19  ;;  %v85_v27 = vshrl.u32 %v466_v26, %v70_v19  ;;  %v73_v31 = vshrl.u32 %v468_v30, %v70_v19  ;;  %v76_v34 = vshrl.u32 %v469_v33, %v70_v19 }
  0xa8   :  { %v79_v36 = vshrl.u32 %v464_v20, %v70_v19  ;;  %v71_v40 = vshrl.u32 %v467_v28, %v70_v19  ;;  %vm88_vm4 = vcmp.lt.s32.totalorder %v68_v18, 2  ;;  %vm89_vm5 = vcmp.lt.s32.totalorder %v68_v18, 3 }
  0xa9   :  { %v83_v37 = vor.u32 %v82_v25, %v81_v21  ;;  %v86_v38 = vor.u32 %v85_v27, %v84_v23  ;;  %v74_v39 = vor.u32 %v73_v31, %v72_v29  ;;  %v77_v41 = vor.u32 %v76_v34, %v75_v32 }
  0xaa   :  { %v80_v42 = vor.u32 %v79_v36, %v78_v35 }
  0xab   :  { %v96_v43 = vsel %vm90_vm2, %v83_v37, 920167782  ;;  %v100_v44 = vsel %vm90_vm2, %v86_v38, 1326507024  ;;  %v95_v46 = vsel %vm87_vm3, %v74_v39, %v77_v41  ;;  %v91_v49 = vsel %vm87_vm3, %v71_v40, %v74_v39  ;;  %v246_v38 = vld [vmem:[#allocation2 + $0x8] sm:$0xff] }
  0xac   :  { %v92_v45 = vsel %vm90_vm2, %v80_v42, 2102212464  ;;  %v97_v47 = vsel %vm89_vm5, %v80_v42, %v96_v43  ;;  %v99_v48 = vsel %vm87_vm3, %v77_v41, %v80_v42  ;;  %v101_v52 = vsel %vm89_vm5, %v83_v37, %v100_v44  ;;  %v245_v37 = vld [vmem:[#allocation2] sm:$0xff]  ;;  %v248_v42 = vld [vmem:[#allocation2 + $0x18] sm:$0xff] }
  0xad   :  { %v93_v50 = vsel %vm89_vm5, %v77_v41, %v92_v45  ;;  %v98_v51 = vsel %vm88_vm4, %v95_v46, %v97_v47  ;;  %v102_v53 = vsel %vm88_vm4, %v99_v48, %v101_v52  ;;  %v378_v39 = vpack.c.bf16 %v246_v38, %v245_v37  ;;  %v247_v41 = vld [vmem:[#allocation2 + $0x10] sm:$0xff]  ;;  %v349_v44 = vld [vmem:[%s569_s4] ss:$0 sm:$0xff]  ;;  %v352_v52 = vld [vmem:[%s569_s4 + $0x1] ss:$0 sm:$0xff] }
  0xae   :  { %v532_v54 = vmul.u32.u64.low %v103_v24, %v98_v51  ;;  %v533_v55 = vmul.u32.u64.high %v103_v24, %v98_v51, %v532_v54  ;;  %v535_v56 = vmul.u32.u64.low %v103_v24, %v102_v53  ;;  %v536_v57 = vmul.u32.u64.high %v103_v24, %v102_v53, %v535_v56 }
  0xaf   :  { %v94_v58 = vsel %vm88_vm4, %v91_v49, %v93_v50  ;;  %v470_v40 = vmov 0.0|0.0   ;;  %v381_v43 = vpack.c.bf16 %v248_v42, %v247_v41 }
  0xb0   :  { %v113_v59 = vadd.s32 1, %v533_v55  ;;  %v110_v60 = vmul.u32 %v103_v24, %v94_v58  ;;  %vm112_vm6 = vc.u32 %v536_v57, %v532_v54  ;;  %v111_v9 = vadd.s32 %v532_v54, %v536_v57  ;;  %377 = vmatprep.subr.bf16.mxu1 %v470_v40 }
  0xb1   :  { %379 = vmatpush3.bf16.msra.mxu1 %v378_v39 }
  0xb2   :  { %v114_v61 = vsel %vm112_vm6, %v113_v59, %v533_v55  ;;  %380 = vmatprep.subr.bf16.mxu1 %v470_v40 }
  0xb3   :  { %v115_v62 = vadd.s32 %v114_v61, %v110_v60 }
  0xb5   :  { %v116_v63 = vadd.s32 536870912, %v115_v62  ;;  %382 = vmatpush3.bf16.msra.mxu1 %v381_v43 }
  0xb7   :  { %v117_v0 = vshrl.u32 %v116_v63, 30 }
  0xb9   :  { %v118_v1 = vshll.u32 %v117_v0, 30  ;;  %v141_v22 = vsub.s32 4, %v117_v0 }
  0xbb   :  { %v119_v2 = vsub.s32 %v115_v62, %v118_v1  ;;  %v142_v25 = vsel %vm57_vm8, %v141_v22, %v117_v0 }
  0xbc   :  { %v144_v27 = vsel %vm56_vm9, 0, %v142_v25 }
  0xbd   :  { %v121_v3 = vsub.s32 0, %v119_v2  ;;  %v148_v28 = vadd.s32 3, %v144_v27 }
  0xbf   :  { %v346_v4 = vmin.u32 %v121_v3, %v119_v2  ;;  %v149_v29 = vand.u32 3, %v148_v28 }
  0xc1   :  { %v123_v5 = vclz %v346_v4  ;;  %vm154_vm10 = vcmp.eq.s32.totalorder %v149_v29, 2  ;;  %vm151_vm11 = vcmp.eq.s32.totalorder %v149_v29, 0  ;;  %vm150_vm12 = vcmp.lt.s32.totalorder %v149_v29, 2 }
  0xc3   :  { %v347_v6 = vadd.s32 4294967294, %v123_v5 }
  0xc5   :  { %vm348_vm7 = vcmp.lt.s32.totalorder %v347_v6, 0 }
  0xc6   :  { %v126_v7 = vsel %vm348_vm7, 0, %v347_v6 }
  0xc7   :  { %v127_v11 = vsub.s32 32, %v126_v7  ;;  %v131_v12 = vsub.s32 4294967266, %v126_v7  ;;  %v128_v13 = vshll.u32 %v119_v2, %v126_v7 }
  0xc9   :  { %v129_v14 = vshrl.u32 %v111_v9, %v127_v11  ;;  %v132_v15 = vadd.s32 127, %v131_v12 }
  0xcb   :  { %v130_v16 = vor.u32 %v129_v14, %v128_v13  ;;  %v133_v17 = vshll.u32 %v132_v15, 23 }
  0xcd   :  { %v134_v18 = vor.u32 4788187, %v133_v17  ;;  %v137_v20 = vcvt.s32.f32 %v130_v16 }
  0xcf   :  { %v135_v19 = vand.u32 2147483647, %v134_v18 }
  0xd1   :  { %v138_v21 = vmul.f32 %v137_v20, %v135_v19 }
  0xd3   :  { %v139_v23 = vxor.u32 2147483648, %v138_v21 }
  0xd5   :  { %v140_v24 = vsel %vm57_vm8, %v139_v23, %v138_v21 }
  0xd6   :  { %v143_v26 = vsel %vm56_vm9, %v526_v8, %v140_v24 }
  0xd7   :  { %402 = vcosq.f32 %v143_v26 }
  0xd8   :  { %404 = vsinq.f32 %v143_v26 }
  0xe1   :  { %v403_v30 = vpop.eup %402 }
  0xe2   :  { %v405_v31 = vpop.eup %404  ;;  %v155_v32 = vxor.u32 2147483648, %v403_v30 }
  0xe3   :  { %v152_v33 = vxor.u32 2147483648, %v405_v31 }
  0xe4   :  { %v156_v34 = vsel %vm154_vm10, %v155_v32, %v405_v31 }
  0xe5   :  { %v153_v35 = vsel %vm151_vm11, %v403_v30, %v152_v33 }
  0xe6   :  { %v157_v10 = vsel %vm150_vm12, %v153_v35, %v156_v34 }
  0xe7   :  { %v158_v36 = vsel %vm147_vm14, nan, %v157_v10 }
  0xe8   :  { %364 = vmatmul.mubr.msk.f32.vlgmr.msra.gmra.mrb[0].mxu0 %vm164_vm13, %v158_v36 }
 0x1bb   :  { %v234_v45 = vpop.f32.mrb[0].mxu0 }
 0x1bc   :  { %v235_v8 = vadd.f32 %v349_v44, %v234_v45  ;;  %v365_v46 = vpop.f32.mrb[1].mxu0 }
 0x1be   :  { %v351_v47 = vmul.f32 -1.442695, %v235_v8 }
 0x1c0   :  { %406 = vpow2.f32 %v351_v47 }
 0x1ca   :  { %v407_v48 = vpop.eup %406 }
 0x1cb   :  { %v241_v49 = vadd.f32 1.0, %v407_v48 }
 0x1cd   :  { %408 = vrcp.f32 %v241_v49 }
 0x1d7   :  { %v409_v50 = vpop.eup %408 }
 0x1d8   :  { %v244_v51 = vmul.f32 %v409_v50, %v235_v8 }
 0x1da   :  { %375 = vmatmul.mubr.msk.f32.vlgmr.msra.gmra.mrb[0].mxu1 %vm253_vm15, %v244_v51 }
 0x2ad   :  { %v323_v53 = vpop.f32.mrb[0].mxu1 }
 0x2ae   :  { %v324_v54 = vadd.f32 %v352_v52, %v323_v53  ;;  %v376_v55 = vpop.f32.mrb[1].mxu1 }
 0x2b0   :  { %327 = vst.msk [vmem:[#allocation5] sm:$0xff] %vm253_vm15, %v324_v54 }
 0x2b1   :  { %443 = shalt.err (!%p440_p12)
}
 0x2b2   :  { %s444_s20 = scalar_lea.hbm %s570_s5, 128 }
 0x2b3   :  { %p445_p13 = scmp.ne.s32.totalorder %s570_s5, %s444_s20  ;;  %p448_p0 = scmp.lt.u32.totalorder %s444_s20, %s570_s5 }
 0x2b5   :  { %p450_p1 = pnand %p448_p0, %p445_p13 }
 0x2b7   :  { %453 = shalt.err (!%p450_p1)
}
 0x2b8   :  { %337 = dma.vmem_to_hbm [thread:$0]  %s335_s16, 128, %s570_s5, [#allocation4]  }
 0x2b9   :  { %456 = dma.done.wait [#allocation4], 128  }
 0x2ba   :  { %457 = vsyncadd [#allocation4], 4294967168 }
 0x2bb   :  { %341 = vsyncpa [#allocation3], 1 }
 0x2bc   :  { %342 = vsyncpa [#allocation4], 1 }

// kernel: tpu_custom_call.1
= control target key start
LH: loop header
LB: loop body
LE: loop exit
PB: predicated region body
PF: predicated region fallthrough
CT: control target
= control target key end

     0   :  { %10 = vsyncpa [#allocation3], 0  ;;  %s565_s0 = inlined_call_operand.vmem [shape: f32[8,1], index: 0, kind: input, shape index: {}]   ;;  %s566_s1 = inlined_call_operand.vmem [shape: f32[8,32], index: 1, kind: input, shape index: {}]   ;;  %s567_s2 = inlined_call_operand.hbm [shape: f32[32,32], index: 2, kind: input, shape index: {}]   ;;  %s568_s3 = inlined_call_operand.vmem [shape: f32[2,8], index: 3, kind: input, shape index: {}]   ;;  %s569_s4 = inlined_call_operand.vmem [shape: f32[2,32], index: 4, kind: input, shape index: {}]   ;;  %s570_s5 = inlined_call_operand.hbm [shape: f32[8,32], index: 5, kind: output, shape index: {}]  }
   0x1   :  { %11 = vsyncpa [#allocation4], 0  ;;  %s458_s18 = smov [#allocation2]   ;;  %s410_s22 = scalar_lea.hbm %s567_s2, 512 }
   0x2   :  { %s21_s19 = sshll.u32 %s458_s18, 4  ;;  %p411_p0 = scmp.ne.s32.totalorder %s567_s2, %s410_s22  ;;  %s22_s19 = int_to_ptr.vmem [resolvable:$true] %s21_s19 }
   0x3   :  { %p414_p1 = scmp.lt.u32.totalorder %s410_s22, %s567_s2 }
   0x5   :  { %p416_p2 = pnand %p414_p1, %p411_p0 }
   0x7   :  { %419 = shalt.err (!%p416_p2)
}
   0x8   :  { %s420_s27 = scalar_lea.vmem %s22_s19, 512  ;;  %p425_p4 = scmp.lt.s32.totalorder %s22_s19, %s22_s19 }
   0x9   :  { %p421_p3 = scmp.ne.s32.totalorder %s22_s19, %s420_s27  ;;  %p426_p5 = scmp.lt.s32.totalorder %s420_s27, %s420_s27 }
   0xb   :  { %p427_p6 = por %p426_p5, %p425_p4 }
   0xd   :  { %p428_p7 = pnand %p427_p6, %p421_p3 }
   0xf   :  { %431 = shalt.err (!%p428_p7)
}
  0x10   :  { %s459_s28 = smov 128   ;;  %s460_s29 = smov 8  }
  0x11   :  { %27 = dma.hbm_to_vmem [thread:$0]  %s567_s2, 512, %s22_s19, [#allocation3], %s459_s28, %s459_s28, %s460_s29  }
  0x12   :  { %454 = dma.done.wait [#allocation3], 512  }
  0x13   :  { %455 = vsyncadd [#allocation3], 4294966784  ;;  %v461_v0 = vmov 0   ;;  %v35_v1 = vld [vmem:[%s565_s0] sm:$0xff]  ;;  %v462_v3 = vmov 0.0   ;;  %vm463_vm0 = vmmov 0  }
  0x14   :  { %401 = vset.pattern.permute.xlu0 %v461_v0  ;;  %v159_v2 = vld [vmem:[%s566_s1] sm:$0xff]  ;;  %361 = vmatprep.subr.mxu0 %v462_v3  ;;  %v464_v20 = vmov 2102212464   ;;  %v465_v22 = vmov 920167782   ;;  %vm164_vm13 = vcmask 64512  }
  0x15   :  { %42 = vperm.xlu0 %401, %v35_v1   ;;  %363 = vmatprep.mubr.msk.f32.mxu0 %vm463_vm0, %v462_v3  ;;  %v343_v4 = vld [vmem:[%s568_s3] ss:$0 sm:$0xff]  ;;  %v344_v5 = vld [vmem:[%s568_s3 + $0x1] ss:$0 sm:$0xff]  ;;  %v466_v26 = vmov 1326507024  }
  0x16   :  { %362 = vmatpush3.msra.mxu0 %v159_v2  ;;  %374 = vmatprep.mubr.msk.f32.mxu1 %vm463_vm0, %v462_v3  ;;  %v467_v28 = vmov 683565275   ;;  %v468_v30 = vmov 2475754826   ;;  %v469_v33 = vmov 2131351028  }
  0x17   :  { %vm253_vm15 = vcmask 261120   ;;  %s471_s15 = smov [#allocation5]  }
  0x18   :  { %s334_s16 = sshll.u32 %s471_s15, 4  ;;  %s335_s16 = int_to_ptr.vmem [resolvable:$true] %s334_s16 }
  0x19   :  { %s432_s17 = scalar_lea.vmem %s335_s16, 128  ;;  %p437_p9 = scmp.lt.s32.totalorder %s335_s16, %s335_s16 }
  0x1a   :  { %p433_p8 = scmp.ne.s32.totalorder %s335_s16, %s432_s17  ;;  %p438_p10 = scmp.lt.s32.totalorder %s432_s17, %s432_s17 }
  0x1c   :  { %p439_p11 = por %p438_p10, %p437_p9 }
  0x1e   :  { %p440_p12 = pnand %p439_p11, %p433_p8 }
  0x94   :  { %v43_v6 = vpop.permute.xlu0 %42 }
  0x95   :  { %v49_v7 = vmul.f32 %v343_v4, %v43_v6 }
  0x97   :  { %v526_v8 = vadd.f32 %v344_v5, %v49_v7 }
  0x99   :  { %v58_v9 = vand.u32 2139095040, %v526_v8  ;;  %v55_v10 = vand.u32 2147483647, %v526_v8  ;;  %vm57_vm8 = vcmp.lt.s32.totalorder %v526_v8, 0  ;;  %vm147_vm14 = vweird.f32 %v526_v8 }
  0x9b   :  { %v59_v11 = vshrl.u32 %v58_v9, 23  ;;  %v62_v13 = vand.u32 8388607, %v55_v10  ;;  %vm56_vm9 = vcmp.le.f32.partialorder %v55_v10, 0.7853982 }
  0x9d   :  { %v345_v12 = vadd.s32 4294967169, %v59_v11  ;;  %v63_v16 = vor.u32 8388608, %v62_v13 }
  0x9f   :  { %v65_v14 = vadd.s32 1, %v345_v12  ;;  %v103_v24 = vshll.u32 %v63_v16, 8 }
  0xa1   :  { %vm66_vm1 = vcmp.gt.s32.totalorder %v65_v14, 0 }
  0xa2   :  { %v67_v15 = vsel %vm66_vm1, %v65_v14, 0 }
  0xa3   :  { %v69_v17 = vand.u32 31, %v67_v15  ;;  %v68_v18 = vshrl.u32 %v67_v15, 5 }
  0xa5   :  { %v70_v19 = vsub.s32 32, %v69_v17  ;;  %v81_v21 = vshll.u32 %v464_v20, %v69_v17  ;;  %v84_v23 = vshll.u32 %v465_v22, %v69_v17  ;;  %v72_v29 = vshll.u32 %v467_v28, %v69_v17 }
  0xa6   :  { %v75_v32 = vshll.u32 %v468_v30, %v69_v17  ;;  %v78_v35 = vshll.u32 %v469_v33, %v69_v17  ;;  %vm90_vm2 = vcmp.lt.s32.totalorder %v68_v18, 4  ;;  %vm87_vm3 = vcmp.lt.s32.totalorder %v68_v18, 1 }
  0xa7   :  { %v82_v25 = vshrl.u32 %v465_v22, %v70_v19  ;;  %v85_v27 = vshrl.u32 %v466_v26, %v70_v19  ;;  %v73_v31 = vshrl.u32 %v468_v30, %v70_v19  ;;  %v76_v34 = vshrl.u32 %v469_v33, %v70_v19 }
  0xa8   :  { %v79_v36 = vshrl.u32 %v464_v20, %v70_v19  ;;  %v71_v40 = vshrl.u32 %v467_v28, %v70_v19  ;;  %vm88_vm4 = vcmp.lt.s32.totalorder %v68_v18, 2  ;;  %vm89_vm5 = vcmp.lt.s32.totalorder %v68_v18, 3 }
  0xa9   :  { %v83_v37 = vor.u32 %v82_v25, %v81_v21  ;;  %v86_v38 = vor.u32 %v85_v27, %v84_v23  ;;  %v74_v39 = vor.u32 %v73_v31, %v72_v29  ;;  %v77_v41 = vor.u32 %v76_v34, %v75_v32 }
  0xaa   :  { %v80_v42 = vor.u32 %v79_v36, %v78_v35 }
  0xab   :  { %v96_v43 = vsel %vm90_vm2, %v83_v37, 920167782  ;;  %v100_v44 = vsel %vm90_vm2, %v86_v38, 1326507024  ;;  %v95_v46 = vsel %vm87_vm3, %v74_v39, %v77_v41  ;;  %v91_v49 = vsel %vm87_vm3, %v71_v40, %v74_v39  ;;  %v246_v38 = vld [vmem:[#allocation2 + $0x8] sm:$0xff] }
  0xac   :  { %v92_v45 = vsel %vm90_vm2, %v80_v42, 2102212464  ;;  %v97_v47 = vsel %vm89_vm5, %v80_v42, %v96_v43  ;;  %v99_v48 = vsel %vm87_vm3, %v77_v41, %v80_v42  ;;  %v101_v52 = vsel %vm89_vm5, %v83_v37, %v100_v44  ;;  %v245_v37 = vld [vmem:[#allocation2] sm:$0xff]  ;;  %v248_v42 = vld [vmem:[#allocation2 + $0x18] sm:$0xff] }
  0xad   :  { %v93_v50 = vsel %vm89_vm5, %v77_v41, %v92_v45  ;;  %v98_v51 = vsel %vm88_vm4, %v95_v46, %v97_v47  ;;  %v102_v53 = vsel %vm88_vm4, %v99_v48, %v101_v52  ;;  %v378_v39 = vpack.c.bf16 %v246_v38, %v245_v37  ;;  %v247_v41 = vld [vmem:[#allocation2 + $0x10] sm:$0xff]  ;;  %v349_v44 = vld [vmem:[%s569_s4] ss:$0 sm:$0xff]  ;;  %v352_v52 = vld [vmem:[%s569_s4 + $0x1] ss:$0 sm:$0xff] }
  0xae   :  { %v532_v54 = vmul.u32.u64.low %v103_v24, %v98_v51  ;;  %v533_v55 = vmul.u32.u64.high %v103_v24, %v98_v51, %v532_v54  ;;  %v535_v56 = vmul.u32.u64.low %v103_v24, %v102_v53  ;;  %v536_v57 = vmul.u32.u64.high %v103_v24, %v102_v53, %v535_v56 }
  0xaf   :  { %v94_v58 = vsel %vm88_vm4, %v91_v49, %v93_v50  ;;  %v470_v40 = vmov 0.0|0.0   ;;  %v381_v43 = vpack.c.bf16 %v248_v42, %v247_v41 }
  0xb0   :  { %v113_v59 = vadd.s32 1, %v533_v55  ;;  %v110_v60 = vmul.u32 %v103_v24, %v94_v58  ;;  %vm112_vm6 = vc.u32 %v536_v57, %v532_v54  ;;  %v111_v9 = vadd.s32 %v532_v54, %v536_v57  ;;  %377 = vmatprep.subr.bf16.mxu1 %v470_v40 }
  0xb1   :  { %379 = vmatpush3.bf16.msra.mxu1 %v378_v39 }
  0xb2   :  { %v114_v61 = vsel %vm112_vm6, %v113_v59, %v533_v55  ;;  %380 = vmatprep.subr.bf16.mxu1 %v470_v40 }
  0xb3   :  { %v115_v62 = vadd.s32 %v114_v61, %v110_v60 }
  0xb5   :  { %v116_v63 = vadd.s32 536870912, %v115_v62  ;;  %382 = vmatpush3.bf16.msra.mxu1 %v381_v43 }
  0xb7   :  { %v117_v0 = vshrl.u32 %v116_v63, 30 }
  0xb9   :  { %v118_v1 = vshll.u32 %v117_v0, 30  ;;  %v141_v22 = vsub.s32 4, %v117_v0 }
  0xbb   :  { %v119_v2 = vsub.s32 %v115_v62, %v118_v1  ;;  %v142_v25 = vsel %vm57_vm8, %v141_v22, %v117_v0 }
  0xbc   :  { %v144_v27 = vsel %vm56_vm9, 0, %v142_v25 }
  0xbd   :  { %v121_v3 = vsub.s32 0, %v119_v2  ;;  %v148_v28 = vadd.s32 3, %v144_v27 }
  0xbf   :  { %v346_v4 = vmin.u32 %v121_v3, %v119_v2  ;;  %v149_v29 = vand.u32 3, %v148_v28 }
  0xc1   :  { %v123_v5 = vclz %v346_v4  ;;  %vm154_vm10 = vcmp.eq.s32.totalorder %v149_v29, 2  ;;  %vm151_vm11 = vcmp.eq.s32.totalorder %v149_v29, 0  ;;  %vm150_vm12 = vcmp.lt.s32.totalorder %v149_v29, 2 }
  0xc3   :  { %v347_v6 = vadd.s32 4294967294, %v123_v5 }
  0xc5   :  { %vm348_vm7 = vcmp.lt.s32.totalorder %v347_v6, 0 }
  0xc6   :  { %v126_v7 = vsel %vm348_vm7, 0, %v347_v6 }
  0xc7   :  { %v127_v11 = vsub.s32 32, %v126_v7  ;;  %v131_v12 = vsub.s32 4294967266, %v126_v7  ;;  %v128_v13 = vshll.u32 %v119_v2, %v126_v7 }
  0xc9   :  { %v129_v14 = vshrl.u32 %v111_v9, %v127_v11  ;;  %v132_v15 = vadd.s32 127, %v131_v12 }
  0xcb   :  { %v130_v16 = vor.u32 %v129_v14, %v128_v13  ;;  %v133_v17 = vshll.u32 %v132_v15, 23 }
  0xcd   :  { %v134_v18 = vor.u32 4788187, %v133_v17  ;;  %v137_v20 = vcvt.s32.f32 %v130_v16 }
  0xcf   :  { %v135_v19 = vand.u32 2147483647, %v134_v18 }
  0xd1   :  { %v138_v21 = vmul.f32 %v137_v20, %v135_v19 }
  0xd3   :  { %v139_v23 = vxor.u32 2147483648, %v138_v21 }
  0xd5   :  { %v140_v24 = vsel %vm57_vm8, %v139_v23, %v138_v21 }
  0xd6   :  { %v143_v26 = vsel %vm56_vm9, %v526_v8, %v140_v24 }
  0xd7   :  { %402 = vcosq.f32 %v143_v26 }
  0xd8   :  { %404 = vsinq.f32 %v143_v26 }
  0xe1   :  { %v403_v30 = vpop.eup %402 }
  0xe2   :  { %v405_v31 = vpop.eup %404  ;;  %v155_v32 = vxor.u32 2147483648, %v403_v30 }
  0xe3   :  { %v152_v33 = vxor.u32 2147483648, %v405_v31 }
  0xe4   :  { %v156_v34 = vsel %vm154_vm10, %v155_v32, %v405_v31 }
  0xe5   :  { %v153_v35 = vsel %vm151_vm11, %v403_v30, %v152_v33 }
  0xe6   :  { %v157_v10 = vsel %vm150_vm12, %v153_v35, %v156_v34 }
  0xe7   :  { %v158_v36 = vsel %vm147_vm14, nan, %v157_v10 }
  0xe8   :  { %364 = vmatmul.mubr.msk.f32.vlgmr.msra.gmra.mrb[0].mxu0 %vm164_vm13, %v158_v36 }
 0x1bb   :  { %v234_v45 = vpop.f32.mrb[0].mxu0 }
 0x1bc   :  { %v235_v8 = vadd.f32 %v349_v44, %v234_v45  ;;  %v365_v46 = vpop.f32.mrb[1].mxu0 }
 0x1be   :  { %v351_v47 = vmul.f32 -1.442695, %v235_v8 }
 0x1c0   :  { %406 = vpow2.f32 %v351_v47 }
 0x1ca   :  { %v407_v48 = vpop.eup %406 }
 0x1cb   :  { %v241_v49 = vadd.f32 1.0, %v407_v48 }
 0x1cd   :  { %408 = vrcp.f32 %v241_v49 }
 0x1d7   :  { %v409_v50 = vpop.eup %408 }
 0x1d8   :  { %v244_v51 = vmul.f32 %v409_v50, %v235_v8 }
 0x1da   :  { %375 = vmatmul.mubr.msk.f32.vlgmr.msra.gmra.mrb[0].mxu1 %vm253_vm15, %v244_v51 }
 0x2ad   :  { %v323_v53 = vpop.f32.mrb[0].mxu1 }
 0x2ae   :  { %v324_v54 = vadd.f32 %v352_v52, %v323_v53  ;;  %v376_v55 = vpop.f32.mrb[1].mxu1 }
 0x2b0   :  { %327 = vst.msk [vmem:[#allocation5] sm:$0xff] %vm253_vm15, %v324_v54 }
 0x2b1   :  { %443 = shalt.err (!%p440_p12)
}
 0x2b2   :  { %s444_s20 = scalar_lea.hbm %s570_s5, 128 }
 0x2b3   :  { %p445_p13 = scmp.ne.s32.totalorder %s570_s5, %s444_s20  ;;  %p448_p0 = scmp.lt.u32.totalorder %s444_s20, %s570_s5 }
 0x2b5   :  { %p450_p1 = pnand %p448_p0, %p445_p13 }
 0x2b7   :  { %453 = shalt.err (!%p450_p1)
}
 0x2b8   :  { %337 = dma.vmem_to_hbm [thread:$0]  %s335_s16, 128, %s570_s5, [#allocation4]  }
 0x2b9   :  { %456 = dma.done.wait [#allocation4], 128  }
 0x2ba   :  { %457 = vsyncadd [#allocation4], 4294967168 }
 0x2bb   :  { %341 = vsyncpa [#allocation3], 1 }
 0x2bc   :  { %342 = vsyncpa [#allocation4], 1 }

</bundles_post_ra>
